<compile_context>
chip_gen: v7x
topology: tpu7x:2x2x1
jax: 0.10.0
libtpu: 0.0.40
codegen_flags: <defaults>
</compile_context>

<pallas_src>
import math

import jax
import jax.numpy as jnp
from jax.experimental import pallas as pl
from jax.experimental.pallas import tpu as pltpu


def _pooler_kernel(x_ref, w1_ref, b1_ref, w2_ref, b2_ref, w3_ref, b3_ref, o_ref):
    # x_ref:  [tb, D]  token-0 rows (already exact; no in-kernel seq slicing)
    # w*_ref: [D, D]   weights, pre-transposed so y = x @ W + b
    # b*_ref: [1, D]   biases
    # o_ref:  [tb, D]
    h = x_ref[...]

    def layer(h, w_ref, b_ref):
        # Native-dtype MXU operands, f32 accumulation on the MXU result path.
        acc = jnp.dot(h.astype(w_ref.dtype), w_ref[...],
                      preferred_element_type=jnp.float32)
        acc = acc + b_ref[...].astype(jnp.float32)
        return jnp.maximum(acc, 0.0)

    h = layer(h, w1_ref, b1_ref)
    h = layer(h, w2_ref, b2_ref)
    h = layer(h, w3_ref, b3_ref)

    # TODO(synk): dropout is identity at inference; training-mode dropout
    # (pltpu.prng_* mask) intentionally not applied.
    o_ref[...] = h.astype(o_ref.dtype)


def _round_up(x, m):
    return ((x + m - 1) // m) * m


def simple_pooler_multi_layers(hidden_states, weights, biases, *, batch_tile=512):
    """hidden_states: [B, S, D]; weights: 3 x [D, D] (pre-transposed so
    y = x @ W + b); biases: 3 x [D]."""
    B, S, D = hidden_states.shape
    assert len(weights) == 3 and len(biases) == 3
    b2d = [b.reshape(1, D) for b in biases]

    # ---- exact token-0 input -------------------------------------------------
    if D % 128 == 0 or S == 1:
        # Row-major view [B, S*D]: the (tb, D) block at column-block 0 reads
        # exactly the token-0 elements of each row.
        x_in = hidden_states.reshape(B, S * D)
    else:
        # Small-D fallback (D not a multiple of 128): tiny XLA pre-slice.
        x_in = hidden_states[:, 0, :]

    # ---- batch tile ------------------------------------------------------------
    tb = min(batch_tile, B)
    if B >= 16 and tb >= B:
        # Ensure >= 2 grid steps so the "parallel" batch axis can be split
        # across both v7x TensorCores (no effect on single-TC v5e/v6e).
        tb = _round_up(pl.cdiv(B, 2), 8)
    if tb < B:
        tb = max(8, _round_up(tb, 8))  # sublane-divisible when not full extent
    tb = min(tb, B)
    n_tb = pl.cdiv(B, tb)

    x_isz = jnp.dtype(hidden_states.dtype).itemsize
    w_isz = jnp.dtype(weights[0].dtype).itemsize

    # Exact-slice traffic: token-0 reads + output writes + resident params.
    bytes_accessed = (B * D * x_isz            # token-0 rows read
                      + B * D * x_isz          # output write
                      + 3 * (D * D + D) * w_isz)
    cost = pl.CostEstimate(flops=2 * 3 * B * D * D,
                           transcendentals=0,
                           bytes_accessed=bytes_accessed)

    # Generation-aware VMEM budget (~3/4 of physical: ~96 MiB v5e/v6e, ~48 MiB v7x).
    try:
        vmem_cap = int(pltpu.get_tpu_info().vmem_capacity_bytes)
    except Exception:
        vmem_cap = 128 * 1024 * 1024
    vmem_budget = max(16 * 1024 * 1024, (vmem_cap * 3) // 4)

    x_spec = pl.BlockSpec((tb, D), lambda i: (i, 0))
    out_spec = pl.BlockSpec((tb, D), lambda i: (i, 0))

    def build(single_buffer_weights):
        wkw = ({"pipeline_mode": pl.Buffered(1)} if single_buffer_weights else {})

        def resident(shape):
            # Constant index_map -> stays VMEM-resident across grid steps.
            return pl.BlockSpec(shape, lambda i: (0, 0), **wkw)

        in_specs = [
            x_spec,
            resident((D, D)), resident((1, D)),   # w1, b1
            resident((D, D)), resident((1, D)),   # w2, b2
            resident((D, D)), resident((1, D)),   # w3, b3
        ]

        wbuf = 1 if single_buffer_weights else 2
        vmem_est = (2 * 2 * tb * D * x_isz              # x / out tiles, double-buffered
                    + wbuf * 3 * (D * D + D) * w_isz    # resident params
                    + (1 << 20))                        # slack
        vmem_limit = int(min(max(2 * vmem_est, 16 * 1024 * 1024), vmem_budget))

        return pl.pallas_call(
            _pooler_kernel,
            out_shape=jax.ShapeDtypeStruct((B, D), hidden_states.dtype),
            grid=(n_tb,),
            in_specs=in_specs,
            out_specs=out_spec,
            compiler_params=pltpu.CompilerParams(
                dimension_semantics=("parallel",),   # megacore: split batch tiles
                vmem_limit_bytes=vmem_limit,
            ),
            cost_estimate=cost,
        )

    args = (x_in, weights[0], b2d[0], weights[1], b2d[1], weights[2], b2d[2])
    try:
        # Preferred path: single-buffered resident weights (halves their VMEM).
        return build(True)(*args)
    except Exception:
        # Fallback if this JAX version rejects pl.Buffered(1) on a BlockSpec.
        return build(False)(*args)


def _reference(hidden_states, weights, biases):
    pooled = hidden_states[:, 0, :]
    for w, b in zip(weights, biases):
        pooled = jnp.maximum(pooled @ w + b, 0.0)
    return pooled


if __name__ == "__main__":
    key = jax.random.PRNGKey(0)
    B, S, D = 2, 8, 32  # batch, seq, d_model
    num_layers = 3

    k_x, *k_params = jax.random.split(key, 1 + 2 * num_layers)
    hidden_states = jax.random.normal(k_x, (B, S, D), dtype=jnp.float32)

    # nn.Linear(d_model, d_model): weight [D, D], bias [D].
    # Weights stored pre-transposed so y = x @ W + b.
    weights, biases = [], []
    for i in range(num_layers):
        kw, kb = k_params[2 * i], k_params[2 * i + 1]
        bound = 1.0 / math.sqrt(D)
        weights.append(jax.random.uniform(kw, (D, D), jnp.float32, -bound, bound))
        biases.append(jax.random.uniform(kb, (D,), jnp.float32, -bound, bound))

    out = simple_pooler_multi_layers(hidden_states, weights, biases)
    out = jax.block_until_ready(out)

    ref = _reference(hidden_states, weights, biases)
    assert out.shape == (B, D)
    assert jnp.allclose(out, ref, atol=1e-5, rtol=1e-5), "mismatch vs reference"

    print("KERNEL_OK")
</pallas_src>

<mosaic_0001>
module attributes {stable_mosaic.version = 11 : i64} {
  func.func @_pooler_kernel(%arg0: i32, %arg1: memref<2x32xf32, #tpu.memory_space<vmem>>, %arg2: memref<32x32xf32, #tpu.memory_space<vmem>>, %arg3: memref<1x32xf32, #tpu.memory_space<vmem>>, %arg4: memref<32x32xf32, #tpu.memory_space<vmem>>, %arg5: memref<1x32xf32, #tpu.memory_space<vmem>>, %arg6: memref<32x32xf32, #tpu.memory_space<vmem>>, %arg7: memref<1x32xf32, #tpu.memory_space<vmem>>, %arg8: memref<2x32xf32, #tpu.memory_space<vmem>>) attributes {dimension_semantics = [#tpu.dimension_semantics<parallel>], iteration_bounds = array<i64: 1>, scalar_prefetch = 0 : i64, scratch_operands = 0 : i64, tpu.core_type = #tpu.core_type<tc>, window_params = [{transform_indices = @transform_0, window_bounds = array<i64: 2, 32>}, {pipeline_mode = #tpu.pipeline_mode<synchronous>, transform_indices = @transform_1, window_bounds = array<i64: 32, 32>}, {pipeline_mode = #tpu.pipeline_mode<synchronous>, transform_indices = @transform_2, window_bounds = array<i64: 1, 32>}, {pipeline_mode = #tpu.pipeline_mode<synchronous>, transform_indices = @transform_3, window_bounds = array<i64: 32, 32>}, {pipeline_mode = #tpu.pipeline_mode<synchronous>, transform_indices = @transform_4, window_bounds = array<i64: 1, 32>}, {pipeline_mode = #tpu.pipeline_mode<synchronous>, transform_indices = @transform_5, window_bounds = array<i64: 32, 32>}, {pipeline_mode = #tpu.pipeline_mode<synchronous>, transform_indices = @transform_6, window_bounds = array<i64: 1, 32>}, {transform_indices = @transform_7, window_bounds = array<i64: 2, 32>}]} {
    %c0 = arith.constant 0 : index
    %c0_0 = arith.constant 0 : index
    %0 = vector.load %arg1[%c0, %c0_0] : memref<2x32xf32, #tpu.memory_space<vmem>>, vector<2x32xf32>
    %c0_1 = arith.constant 0 : index
    %c0_2 = arith.constant 0 : index
    %1 = vector.load %arg2[%c0_1, %c0_2] : memref<32x32xf32, #tpu.memory_space<vmem>>, vector<32x32xf32>
    %cst = arith.constant dense<0.000000e+00> : vector<2x32xf32>
    %2 = tpu.matmul %0, %1, %cst {dimension_numbers = #tpu.dot_dimension_numbers<[1], [0], [0], [1], [0, 0, 1, 1], [], []>} : vector<2x32xf32>, vector<32x32xf32>, vector<2x32xf32> -> vector<2x32xf32>
    %c0_3 = arith.constant 0 : index
    %c0_4 = arith.constant 0 : index
    %3 = vector.load %arg3[%c0_3, %c0_4] : memref<1x32xf32, #tpu.memory_space<vmem>>, vector<1x32xf32>
    %4 = vector.broadcast %3 : vector<1x32xf32> to vector<2x32xf32>
    %5 = arith.addf %2, %4 : vector<2x32xf32>
    %cst_5 = arith.constant 0.000000e+00 : f32
    %6 = vector.broadcast %cst_5 : f32 to vector<2x32xf32>
    %7 = arith.maximumf %5, %6 : vector<2x32xf32>
    %c0_6 = arith.constant 0 : index
    %c0_7 = arith.constant 0 : index
    %8 = vector.load %arg4[%c0_6, %c0_7] : memref<32x32xf32, #tpu.memory_space<vmem>>, vector<32x32xf32>
    %cst_8 = arith.constant dense<0.000000e+00> : vector<2x32xf32>
    %9 = tpu.matmul %7, %8, %cst_8 {dimension_numbers = #tpu.dot_dimension_numbers<[1], [0], [0], [1], [0, 0, 1, 1], [], []>} : vector<2x32xf32>, vector<32x32xf32>, vector<2x32xf32> -> vector<2x32xf32>
    %c0_9 = arith.constant 0 : index
    %c0_10 = arith.constant 0 : index
    %10 = vector.load %arg5[%c0_9, %c0_10] : memref<1x32xf32, #tpu.memory_space<vmem>>, vector<1x32xf32>
    %11 = vector.broadcast %10 : vector<1x32xf32> to vector<2x32xf32>
    %12 = arith.addf %9, %11 : vector<2x32xf32>
    %cst_11 = arith.constant 0.000000e+00 : f32
    %13 = vector.broadcast %cst_11 : f32 to vector<2x32xf32>
    %14 = arith.maximumf %12, %13 : vector<2x32xf32>
    %c0_12 = arith.constant 0 : index
    %c0_13 = arith.constant 0 : index
    %15 = vector.load %arg6[%c0_12, %c0_13] : memref<32x32xf32, #tpu.memory_space<vmem>>, vector<32x32xf32>
    %cst_14 = arith.constant dense<0.000000e+00> : vector<2x32xf32>
    %16 = tpu.matmul %14, %15, %cst_14 {dimension_numbers = #tpu.dot_dimension_numbers<[1], [0], [0], [1], [0, 0, 1, 1], [], []>} : vector<2x32xf32>, vector<32x32xf32>, vector<2x32xf32> -> vector<2x32xf32>
    %c0_15 = arith.constant 0 : index
    %c0_16 = arith.constant 0 : index
    %17 = vector.load %arg7[%c0_15, %c0_16] : memref<1x32xf32, #tpu.memory_space<vmem>>, vector<1x32xf32>
    %18 = vector.broadcast %17 : vector<1x32xf32> to vector<2x32xf32>
    %19 = arith.addf %16, %18 : vector<2x32xf32>
    %cst_17 = arith.constant 0.000000e+00 : f32
    %20 = vector.broadcast %cst_17 : f32 to vector<2x32xf32>
    %21 = arith.maximumf %19, %20 : vector<2x32xf32>
    %c0_18 = arith.constant 0 : index
    %c0_19 = arith.constant 0 : index
    %22 = vector.load %arg8[%c0_18, %c0_19] : memref<2x32xf32, #tpu.memory_space<vmem>>, vector<2x32xf32>
    tpu.vector_store %arg8[%c0_18, %c0_19], %21 {strides = array<i32>} : memref<2x32xf32, #tpu.memory_space<vmem>>, vector<2x32xf32>,
    return
  }
  func.func @transform_0(%arg0: i32) -> (i32, i32) {
    %c0_i32 = arith.constant 0 : i32
    %c0_i32_0 = arith.constant 0 : i32
    return %arg0, %c0_i32 : i32, i32
  }
  func.func @transform_1(%arg0: i32) -> (i32, i32) {
    %c0_i32 = arith.constant 0 : i32
    %c0_i32_0 = arith.constant 0 : i32
    %c0_i32_1 = arith.constant 0 : i32
    return %c0_i32, %c0_i32_0 : i32, i32
  }
  func.func @transform_2(%arg0: i32) -> (i32, i32) {
    %c0_i32 = arith.constant 0 : i32
    %c0_i32_0 = arith.constant 0 : i32
    %c0_i32_1 = arith.constant 0 : i32
    return %c0_i32, %c0_i32_0 : i32, i32
  }
  func.func @transform_3(%arg0: i32) -> (i32, i32) {
    %c0_i32 = arith.constant 0 : i32
    %c0_i32_0 = arith.constant 0 : i32
    %c0_i32_1 = arith.constant 0 : i32
    return %c0_i32, %c0_i32_0 : i32, i32
  }
  func.func @transform_4(%arg0: i32) -> (i32, i32) {
    %c0_i32 = arith.constant 0 : i32
    %c0_i32_0 = arith.constant 0 : i32
    %c0_i32_1 = arith.constant 0 : i32
    return %c0_i32, %c0_i32_0 : i32, i32
  }
  func.func @transform_5(%arg0: i32) -> (i32, i32) {
    %c0_i32 = arith.constant 0 : i32
    %c0_i32_0 = arith.constant 0 : i32
    %c0_i32_1 = arith.constant 0 : i32
    return %c0_i32, %c0_i32_0 : i32, i32
  }
  func.func @transform_6(%arg0: i32) -> (i32, i32) {
    %c0_i32 = arith.constant 0 : i32
    %c0_i32_0 = arith.constant 0 : i32
    %c0_i32_1 = arith.constant 0 : i32
    return %c0_i32, %c0_i32_0 : i32, i32
  }
  func.func @transform_7(%arg0: i32) -> (i32, i32) {
    %c0_i32 = arith.constant 0 : i32
    %c0_i32_0 = arith.constant 0 : i32
    return %arg0, %c0_i32 : i32, i32
  }
}

module attributes {stable_mosaic.version = 11 : i64} {
  func.func @_pooler_kernel(%arg0: i32, %arg1: memref<2x32xf32, #tpu.memory_space<vmem>>, %arg2: memref<32x32xf32, #tpu.memory_space<vmem>>, %arg3: memref<1x32xf32, #tpu.memory_space<vmem>>, %arg4: memref<32x32xf32, #tpu.memory_space<vmem>>, %arg5: memref<1x32xf32, #tpu.memory_space<vmem>>, %arg6: memref<32x32xf32, #tpu.memory_space<vmem>>, %arg7: memref<1x32xf32, #tpu.memory_space<vmem>>, %arg8: memref<2x32xf32, #tpu.memory_space<vmem>>) attributes {dimension_semantics = [#tpu.dimension_semantics<parallel>], iteration_bounds = array<i64: 1>, scalar_prefetch = 0 : i64, scratch_operands = 0 : i64, tpu.core_type = #tpu.core_type<tc>, window_params = [{transform_indices = @transform_0, window_bounds = array<i64: 2, 32>}, {pipeline_mode = #tpu.pipeline_mode<synchronous>, transform_indices = @transform_1, window_bounds = array<i64: 32, 32>}, {pipeline_mode = #tpu.pipeline_mode<synchronous>, transform_indices = @transform_2, window_bounds = array<i64: 1, 32>}, {pipeline_mode = #tpu.pipeline_mode<synchronous>, transform_indices = @transform_3, window_bounds = array<i64: 32, 32>}, {pipeline_mode = #tpu.pipeline_mode<synchronous>, transform_indices = @transform_4, window_bounds = array<i64: 1, 32>}, {pipeline_mode = #tpu.pipeline_mode<synchronous>, transform_indices = @transform_5, window_bounds = array<i64: 32, 32>}, {pipeline_mode = #tpu.pipeline_mode<synchronous>, transform_indices = @transform_6, window_bounds = array<i64: 1, 32>}, {transform_indices = @transform_7, window_bounds = array<i64: 2, 32>}]} {
    %c0 = arith.constant 0 : index
    %c0_0 = arith.constant 0 : index
    %0 = vector.load %arg1[%c0, %c0_0] : memref<2x32xf32, #tpu.memory_space<vmem>>, vector<2x32xf32>
    %c0_1 = arith.constant 0 : index
    %c0_2 = arith.constant 0 : index
    %1 = vector.load %arg2[%c0_1, %c0_2] : memref<32x32xf32, #tpu.memory_space<vmem>>, vector<32x32xf32>
    %cst = arith.constant dense<0.000000e+00> : vector<2x32xf32>
    %2 = tpu.matmul %0, %1, %cst {dimension_numbers = #tpu.dot_dimension_numbers<[1], [0], [0], [1], [0, 0, 1, 1], [], []>} : vector<2x32xf32>, vector<32x32xf32>, vector<2x32xf32> -> vector<2x32xf32>
    %c0_3 = arith.constant 0 : index
    %c0_4 = arith.constant 0 : index
    %3 = vector.load %arg3[%c0_3, %c0_4] : memref<1x32xf32, #tpu.memory_space<vmem>>, vector<1x32xf32>
    %4 = vector.broadcast %3 : vector<1x32xf32> to vector<2x32xf32>
    %5 = arith.addf %2, %4 : vector<2x32xf32>
    %cst_5 = arith.constant 0.000000e+00 : f32
    %6 = vector.broadcast %cst_5 : f32 to vector<2x32xf32>
    %7 = arith.maximumf %5, %6 : vector<2x32xf32>
    %c0_6 = arith.constant 0 : index
    %c0_7 = arith.constant 0 : index
    %8 = vector.load %arg4[%c0_6, %c0_7] : memref<32x32xf32, #tpu.memory_space<vmem>>, vector<32x32xf32>
    %cst_8 = arith.constant dense<0.000000e+00> : vector<2x32xf32>
    %9 = tpu.matmul %7, %8, %cst_8 {dimension_numbers = #tpu.dot_dimension_numbers<[1], [0], [0], [1], [0, 0, 1, 1], [], []>} : vector<2x32xf32>, vector<32x32xf32>, vector<2x32xf32> -> vector<2x32xf32>
    %c0_9 = arith.constant 0 : index
    %c0_10 = arith.constant 0 : index
    %10 = vector.load %arg5[%c0_9, %c0_10] : memref<1x32xf32, #tpu.memory_space<vmem>>, vector<1x32xf32>
    %11 = vector.broadcast %10 : vector<1x32xf32> to vector<2x32xf32>
    %12 = arith.addf %9, %11 : vector<2x32xf32>
    %cst_11 = arith.constant 0.000000e+00 : f32
    %13 = vector.broadcast %cst_11 : f32 to vector<2x32xf32>
    %14 = arith.maximumf %12, %13 : vector<2x32xf32>
    %c0_12 = arith.constant 0 : index
    %c0_13 = arith.constant 0 : index
    %15 = vector.load %arg6[%c0_12, %c0_13] : memref<32x32xf32, #tpu.memory_space<vmem>>, vector<32x32xf32>
    %cst_14 = arith.constant dense<0.000000e+00> : vector<2x32xf32>
    %16 = tpu.matmul %14, %15, %cst_14 {dimension_numbers = #tpu.dot_dimension_numbers<[1], [0], [0], [1], [0, 0, 1, 1], [], []>} : vector<2x32xf32>, vector<32x32xf32>, vector<2x32xf32> -> vector<2x32xf32>
    %c0_15 = arith.constant 0 : index
    %c0_16 = arith.constant 0 : index
    %17 = vector.load %arg7[%c0_15, %c0_16] : memref<1x32xf32, #tpu.memory_space<vmem>>, vector<1x32xf32>
    %18 = vector.broadcast %17 : vector<1x32xf32> to vector<2x32xf32>
    %19 = arith.addf %16, %18 : vector<2x32xf32>
    %cst_17 = arith.constant 0.000000e+00 : f32
    %20 = vector.broadcast %cst_17 : f32 to vector<2x32xf32>
    %21 = arith.maximumf %19, %20 : vector<2x32xf32>
    %c0_18 = arith.constant 0 : index
    %c0_19 = arith.constant 0 : index
    %22 = vector.load %arg8[%c0_18, %c0_19] : memref<2x32xf32, #tpu.memory_space<vmem>>, vector<2x32xf32>
    tpu.vector_store %arg8[%c0_18, %c0_19], %21 {strides = array<i32>} : memref<2x32xf32, #tpu.memory_space<vmem>>, vector<2x32xf32>,
    return
  }
  func.func @transform_0(%arg0: i32) -> (i32, i32) {
    %c0_i32 = arith.constant 0 : i32
    %c0_i32_0 = arith.constant 0 : i32
    return %arg0, %c0_i32 : i32, i32
  }
  func.func @transform_1(%arg0: i32) -> (i32, i32) {
    %c0_i32 = arith.constant 0 : i32
    %c0_i32_0 = arith.constant 0 : i32
    %c0_i32_1 = arith.constant 0 : i32
    return %c0_i32, %c0_i32_0 : i32, i32
  }
  func.func @transform_2(%arg0: i32) -> (i32, i32) {
    %c0_i32 = arith.constant 0 : i32
    %c0_i32_0 = arith.constant 0 : i32
    %c0_i32_1 = arith.constant 0 : i32
    return %c0_i32, %c0_i32_0 : i32, i32
  }
  func.func @transform_3(%arg0: i32) -> (i32, i32) {
    %c0_i32 = arith.constant 0 : i32
    %c0_i32_0 = arith.constant 0 : i32
    %c0_i32_1 = arith.constant 0 : i32
    return %c0_i32, %c0_i32_0 : i32, i32
  }
  func.func @transform_4(%arg0: i32) -> (i32, i32) {
    %c0_i32 = arith.constant 0 : i32
    %c0_i32_0 = arith.constant 0 : i32
    %c0_i32_1 = arith.constant 0 : i32
    return %c0_i32, %c0_i32_0 : i32, i32
  }
  func.func @transform_5(%arg0: i32) -> (i32, i32) {
    %c0_i32 = arith.constant 0 : i32
    %c0_i32_0 = arith.constant 0 : i32
    %c0_i32_1 = arith.constant 0 : i32
    return %c0_i32, %c0_i32_0 : i32, i32
  }
  func.func @transform_6(%arg0: i32) -> (i32, i32) {
    %c0_i32 = arith.constant 0 : i32
    %c0_i32_0 = arith.constant 0 : i32
    %c0_i32_1 = arith.constant 0 : i32
    return %c0_i32, %c0_i32_0 : i32, i32
  }
  func.func @transform_7(%arg0: i32) -> (i32, i32) {
    %c0_i32 = arith.constant 0 : i32
    %c0_i32_0 = arith.constant 0 : i32
    return %arg0, %c0_i32 : i32, i32
  }
}

</mosaic_0001>

<bundles_post_ra>
// kernel: tpu_custom_call.1
= control target key start
LH: loop header
LB: loop body
LE: loop exit
PB: predicated region body
PF: predicated region fallthrough
CT: control target
= control target key end

     0   :  { %12 = vsyncpa [#allocation3], 0  ;;  %s690_s0 = inlined_call_operand.hbm [shape: f32[2,32], index: 0, kind: input, shape index: {}]   ;;  %s691_s1 = inlined_call_operand.hbm [shape: f32[32,32], index: 1, kind: input, shape index: {}]   ;;  %s692_s2 = inlined_call_operand.vmem [shape: f32[1,32], index: 2, kind: input, shape index: {}]   ;;  %s693_s3 = inlined_call_operand.hbm [shape: f32[32,32], index: 3, kind: input, shape index: {}]   ;;  %s694_s4 = inlined_call_operand.vmem [shape: f32[1,32], index: 4, kind: input, shape index: {}]   ;;  %s695_s5 = inlined_call_operand.hbm [shape: f32[32,32], index: 5, kind: input, shape index: {}]   ;;  %s696_s6 = inlined_call_operand.vmem [shape: f32[1,32], index: 6, kind: input, shape index: {}]   ;;  %s697_s7 = inlined_call_operand.hbm [shape: f32[2,32], index: 7, kind: output, shape index: {}]  }
   0x1   :  { %13 = vsyncpa [#allocation6], 0 }
   0x2   :  { %14 = vsyncpa [#allocation9], 0 }
   0x3   :  { %15 = vsyncpa [#allocation4], 0  ;;  %s556_s24 = smov [#allocation5]   ;;  %s438_s28 = scalar_lea.hbm %s691_s1, 512 }
   0x4   :  { %s31_s25 = sshll.u32 %s556_s24, 4  ;;  %p439_p0 = scmp.ne.s32.totalorder %s691_s1, %s438_s28  ;;  %s32_s25 = int_to_ptr.vmem [resolvable:$true] %s31_s25 }
   0x5   :  { %p442_p1 = scmp.lt.u32.totalorder %s438_s28, %s691_s1 }
   0x7   :  { %p444_p2 = pnand %p442_p1, %p439_p0 }
   0x9   :  { %447 = shalt.err (!%p444_p2)
}
   0xa   :  { %s448_s10 = scalar_lea.vmem %s32_s25, 512  ;;  %p453_p4 = scmp.lt.s32.totalorder %s32_s25, %s32_s25 }
   0xb   :  { %p449_p3 = scmp.ne.s32.totalorder %s32_s25, %s448_s10  ;;  %p454_p5 = scmp.lt.s32.totalorder %s448_s10, %s448_s10 }
   0xd   :  { %p455_p6 = por %p454_p5, %p453_p4 }
   0xf   :  { %p456_p7 = pnand %p455_p6, %p449_p3 }
  0x11   :  { %459 = shalt.err (!%p456_p7)
}
  0x12   :  { %s557_s11 = smov 128   ;;  %s558_s12 = smov 8  }
  0x13   :  { %37 = dma.hbm_to_vmem [thread:$0]  %s691_s1, 512, %s32_s25, [#allocation6], %s557_s11, %s557_s11, %s558_s12  }
  0x14   :  { %s559_s15 = smov [#allocation2]   ;;  %s560_s17 = smov [#allocation7]  }
  0x15   :  { %s22_s16 = sshll.u32 %s559_s15, 4  ;;  %s45_s18 = sshll.u32 %s560_s17, 4  ;;  %s23_s16 = int_to_ptr.vmem [resolvable:$true] %s22_s16  ;;  %s46_s18 = int_to_ptr.vmem [resolvable:$true] %s45_s18 }
  0x16   :  { %s460_s21 = scalar_lea.hbm %s690_s0, 32 }
  0x17   :  { %p461_p8 = scmp.ne.s32.totalorder %s690_s0, %s460_s21  ;;  %p464_p9 = scmp.lt.u32.totalorder %s460_s21, %s690_s0 }
  0x19   :  { %p466_p10 = pnand %p464_p9, %p461_p8 }
  0x1b   :  { %469 = shalt.err (!%p466_p10)
}
  0x1c   :  { %s470_s1 = scalar_lea.vmem %s23_s16, 32  ;;  %p475_p12 = scmp.lt.s32.totalorder %s23_s16, %s23_s16 }
  0x1d   :  { %p471_p11 = scmp.ne.s32.totalorder %s23_s16, %s470_s1  ;;  %p476_p13 = scmp.lt.s32.totalorder %s470_s1, %s470_s1 }
  0x1f   :  { %p477_p0 = por %p476_p13, %p475_p12 }
  0x21   :  { %p478_p1 = pnand %p477_p0, %p471_p11 }
  0x23   :  { %481 = shalt.err (!%p478_p1)
}
  0x24   :  { %25 = dma.hbm_to_vmem [thread:$0]  %s690_s0, 32, %s23_s16, [#allocation3]  }
  0x25   :  { %s482_s30 = scalar_lea.hbm %s693_s3, 512 }
  0x26   :  { %p483_p2 = scmp.ne.s32.totalorder %s693_s3, %s482_s30  ;;  %p486_p3 = scmp.lt.u32.totalorder %s482_s30, %s693_s3 }
  0x28   :  { %p488_p4 = pnand %p486_p3, %p483_p2 }
  0x2a   :  { %491 = shalt.err (!%p488_p4)
}
  0x2b   :  { %s492_s14 = scalar_lea.vmem %s46_s18, 512  ;;  %p497_p6 = scmp.lt.s32.totalorder %s46_s18, %s46_s18 }
  0x2c   :  { %p493_p5 = scmp.ne.s32.totalorder %s46_s18, %s492_s14  ;;  %p498_p7 = scmp.lt.s32.totalorder %s492_s14, %s492_s14 }
  0x2e   :  { %p499_p8 = por %p498_p7, %p497_p6 }
  0x30   :  { %p500_p9 = pnand %p499_p8, %p493_p5 }
  0x32   :  { %503 = shalt.err (!%p500_p9)
}
  0x33   :  { %51 = dma.hbm_to_vmem [thread:$0]  %s693_s3, 512, %s46_s18, [#allocation6], %s557_s11, %s557_s11, %s558_s12  }
  0x34   :  { %s561_s16 = smov [#allocation8]   ;;  %s504_s21 = scalar_lea.hbm %s695_s5, 512 }
  0x35   :  { %s59_s17 = sshll.u32 %s561_s16, 4  ;;  %p505_p10 = scmp.ne.s32.totalorder %s695_s5, %s504_s21  ;;  %s60_s17 = int_to_ptr.vmem [resolvable:$true] %s59_s17 }
  0x36   :  { %p508_p11 = scmp.lt.u32.totalorder %s504_s21, %s695_s5 }
  0x38   :  { %p510_p12 = pnand %p508_p11, %p505_p10 }
  0x3a   :  { %513 = shalt.err (!%p510_p12)
}
  0x3b   :  { %s514_s1 = scalar_lea.vmem %s60_s17, 512  ;;  %p519_p0 = scmp.lt.s32.totalorder %s60_s17, %s60_s17 }
  0x3c   :  { %p515_p13 = scmp.ne.s32.totalorder %s60_s17, %s514_s1  ;;  %p520_p1 = scmp.lt.s32.totalorder %s514_s1, %s514_s1 }
  0x3e   :  { %p521_p2 = por %p520_p1, %p519_p0 }
  0x40   :  { %p522_p3 = pnand %p521_p2, %p515_p13 }
  0x42   :  { %525 = shalt.err (!%p522_p3)
}
  0x43   :  { %65 = dma.hbm_to_vmem [thread:$0]  %s695_s5, 512, %s60_s17, [#allocation9], %s557_s11, %s557_s11, %s558_s12  }
  0x44   :  { %548 = dma.done.wait [#allocation3], 32  }
  0x45   :  { %549 = vsyncadd [#allocation3], 4294967264 }
  0x46   :  { %550 = dma.done.wait [#allocation6], 1024  }
  0x47   :  { %551 = vsyncadd [#allocation6], 4294966272 }
  0x48   :  { %552 = dma.done.wait [#allocation9], 512  }
  0x49   :  { %553 = vsyncadd [#allocation9], 4294966784  ;;  %v562_v0 = vmov 0.0|0.0   ;;  %vm563_vm0 = vmmov 0   ;;  %v564_v1 = vmov 0.0   ;;  %v81_v2 = vld [vmem:[#allocation5] sm:$0xff] }
  0x4a   :  { %410 = vmatprep.subr.bf16.mxu0 %v562_v0  ;;  %385 = vmatprep.mubr.msk.f32.mxu0 %vm563_vm0, %v564_v1  ;;  %v82_v3 = vld [vmem:[#allocation5 + $0x8] sm:$0xff]  ;;  %v83_v4 = vld [vmem:[#allocation5 + $0x10] sm:$0xff]  ;;  %v84_v6 = vld [vmem:[#allocation5 + $0x18] sm:$0xff]  ;;  %vm92_vm1 = vcmask 261120   ;;  %s565_s28 = smov [#allocation10]   ;;  %vm337_vm2 = vcmask 254976  }
  0x4b   :  { %416 = vmatprep.subr.bf16.mxu1 %v562_v0  ;;  %396 = vmatprep.mubr.msk.f32.mxu1 %vm563_vm0, %v564_v1  ;;  %v411_v5 = vpack.c.bf16 %v82_v3, %v81_v2  ;;  %v167_v7 = vld [vmem:[#allocation7] sm:$0xff]  ;;  %v168_v8 = vld [vmem:[#allocation7 + $0x8] sm:$0xff]  ;;  %v414_v9 = vpack.c.bf16 %v84_v6, %v83_v4  ;;  %v80_v11 = vld [vmem:[#allocation2] sm:$0x3]  ;;  %s345_s29 = sshll.u32 %s565_s28, 4  ;;  %s346_s29 = int_to_ptr.vmem [resolvable:$true] %s345_s29 }
  0x4c   :  { %v417_v10 = vpack.c.bf16 %v168_v8, %v167_v7  ;;  %v169_v12 = vld [vmem:[#allocation7 + $0x10] sm:$0xff]  ;;  %v170_v13 = vld [vmem:[#allocation7 + $0x18] sm:$0xff]  ;;  %v252_v15 = vld [vmem:[#allocation8] sm:$0xff]  ;;  %p531_p5 = scmp.lt.s32.totalorder %s346_s29, %s346_s29 }
  0x4d   :  { %412 = vmatpush3.bf16.msra.mxu0 %v411_v5  ;;  %v420_v14 = vpack.c.bf16 %v170_v13, %v169_v12  ;;  %v253_v16 = vld [vmem:[#allocation8 + $0x8] sm:$0xff]  ;;  %v356_v18 = vld [vmem:[%s692_s2] ss:$0 sm:$0xff]  ;;  %v254_v23 = vld [vmem:[#allocation8 + $0x10] sm:$0xff] }
  0x4e   :  { %413 = vmatprep.subr.bf16.mxu0 %v562_v0  ;;  %418 = vmatpush3.bf16.msra.mxu1 %v417_v10  ;;  %v423_v17 = vpack.c.bf16 %v253_v16, %v252_v15  ;;  %v255_v24 = vld [vmem:[#allocation8 + $0x18] sm:$0xff] }
  0x4f   :  { %419 = vmatprep.subr.bf16.mxu1 %v562_v0  ;;  %v426_v25 = vpack.c.bf16 %v255_v24, %v254_v23  ;;  %v358_v26 = vld [vmem:[%s694_s4] ss:$0 sm:$0xff]  ;;  %s526_s4 = scalar_lea.vmem %s346_s29, 32 }
  0x50   :  { %v360_v31 = vld [vmem:[%s696_s6] ss:$0 sm:$0xff]  ;;  %p527_p4 = scmp.ne.s32.totalorder %s346_s29, %s526_s4  ;;  %p532_p6 = scmp.lt.s32.totalorder %s526_s4, %s526_s4 }
  0x51   :  { %415 = vmatpush3.bf16.msra.mxu0 %v414_v9 }
  0x52   :  { %422 = vmatprep.subr.bf16.mxu0 %v562_v0  ;;  %421 = vmatpush3.bf16.msra.mxu1 %v420_v14  ;;  %p533_p7 = por %p532_p6, %p531_p5 }
  0x54   :  { %386 = vmatmul.mubr.msk.f32.vlgmr.msra.gmra.mrb[0].mxu0 %vm92_vm1, %v80_v11  ;;  %p534_p8 = pnand %p533_p7, %p527_p4 }
  0x55   :  { %407 = vmatprep.mubr.msk.f32.mxu0 %vm563_vm0, %v564_v1  ;;  %424 = vmatpush3.bf16.msra.mxu0 %v423_v17 }
  0x56   :  { %425 = vmatprep.subr.bf16.mxu0 %v562_v0 }
  0x59   :  { %427 = vmatpush3.bf16.msra.mxu0 %v426_v25 }
 0x127   :  { %v162_v19 = vpop.f32.mrb[0].mxu0 }
 0x128   :  { %v163_v20 = vadd.f32 %v356_v18, %v162_v19  ;;  %v387_v21 = vpop.f32.mrb[1].mxu0 }
 0x12a   :  { %v166_v22 = vmax.f32 %v163_v20, 0.0 }
 0x12c   :  { %397 = vmatmul.mubr.msk.f32.vlgmr.msra.gmra.mrb[0].mxu1 %vm92_vm1, %v166_v22 }
 0x1ff   :  { %v247_v27 = vpop.f32.mrb[0].mxu1 }
 0x200   :  { %v248_v28 = vadd.f32 %v358_v26, %v247_v27  ;;  %v398_v29 = vpop.f32.mrb[1].mxu1 }
 0x202   :  { %v251_v30 = vmax.f32 %v248_v28, 0.0 }
 0x204   :  { %408 = vmatmul.mubr.msk.f32.vlgmr.msra.gmra.mrb[2].mxu0 %vm92_vm1, %v251_v30 }
 0x2d7   :  { %v332_v32 = vpop.f32.mrb[2].mxu0 }
 0x2d8   :  { %v333_v33 = vadd.f32 %v360_v31, %v332_v32  ;;  %v409_v34 = vpop.f32.mrb[3].mxu0 }
 0x2da   :  { %v336_v35 = vmax.f32 %v333_v33, 0.0 }
 0x2dc   :  { %338 = vst.msk [vmem:[#allocation10] sm:$0x3] %vm337_vm2, %v336_v35 }
 0x2dd   :  { %537 = shalt.err (!%p534_p8)
}
 0x2de   :  { %s538_s6 = scalar_lea.hbm %s697_s7, 32 }
 0x2df   :  { %p539_p9 = scmp.ne.s32.totalorder %s697_s7, %s538_s6  ;;  %p542_p10 = scmp.lt.u32.totalorder %s538_s6, %s697_s7 }
 0x2e1   :  { %p544_p11 = pnand %p542_p10, %p539_p9 }
 0x2e3   :  { %547 = shalt.err (!%p544_p11)
}
 0x2e4   :  { %348 = dma.vmem_to_hbm [thread:$0]  %s346_s29, 32, %s697_s7, [#allocation4]  }
 0x2e5   :  { %554 = dma.done.wait [#allocation4], 32  }
 0x2e6   :  { %555 = vsyncadd [#allocation4], 4294967264 }
 0x2e7   :  { %352 = vsyncpa [#allocation3], 1 }
 0x2e8   :  { %353 = vsyncpa [#allocation6], 1 }
 0x2e9   :  { %354 = vsyncpa [#allocation9], 1 }
 0x2ea   :  { %355 = vsyncpa [#allocation4], 1 }

// kernel: tpu_custom_call.1
= control target key start
LH: loop header
LB: loop body
LE: loop exit
PB: predicated region body
PF: predicated region fallthrough
CT: control target
= control target key end

     0   :  { %12 = vsyncpa [#allocation3], 0  ;;  %s690_s0 = inlined_call_operand.hbm [shape: f32[2,32], index: 0, kind: input, shape index: {}]   ;;  %s691_s1 = inlined_call_operand.hbm [shape: f32[32,32], index: 1, kind: input, shape index: {}]   ;;  %s692_s2 = inlined_call_operand.vmem [shape: f32[1,32], index: 2, kind: input, shape index: {}]   ;;  %s693_s3 = inlined_call_operand.hbm [shape: f32[32,32], index: 3, kind: input, shape index: {}]   ;;  %s694_s4 = inlined_call_operand.vmem [shape: f32[1,32], index: 4, kind: input, shape index: {}]   ;;  %s695_s5 = inlined_call_operand.hbm [shape: f32[32,32], index: 5, kind: input, shape index: {}]   ;;  %s696_s6 = inlined_call_operand.vmem [shape: f32[1,32], index: 6, kind: input, shape index: {}]   ;;  %s697_s7 = inlined_call_operand.hbm [shape: f32[2,32], index: 7, kind: output, shape index: {}]  }
   0x1   :  { %13 = vsyncpa [#allocation6], 0 }
   0x2   :  { %14 = vsyncpa [#allocation9], 0 }
   0x3   :  { %15 = vsyncpa [#allocation4], 0  ;;  %s556_s24 = smov [#allocation5]   ;;  %s438_s28 = scalar_lea.hbm %s691_s1, 512 }
   0x4   :  { %s31_s25 = sshll.u32 %s556_s24, 4  ;;  %p439_p0 = scmp.ne.s32.totalorder %s691_s1, %s438_s28  ;;  %s32_s25 = int_to_ptr.vmem [resolvable:$true] %s31_s25 }
   0x5   :  { %p442_p1 = scmp.lt.u32.totalorder %s438_s28, %s691_s1 }
   0x7   :  { %p444_p2 = pnand %p442_p1, %p439_p0 }
   0x9   :  { %447 = shalt.err (!%p444_p2)
}
   0xa   :  { %s448_s10 = scalar_lea.vmem %s32_s25, 512  ;;  %p453_p4 = scmp.lt.s32.totalorder %s32_s25, %s32_s25 }
   0xb   :  { %p449_p3 = scmp.ne.s32.totalorder %s32_s25, %s448_s10  ;;  %p454_p5 = scmp.lt.s32.totalorder %s448_s10, %s448_s10 }
   0xd   :  { %p455_p6 = por %p454_p5, %p453_p4 }
   0xf   :  { %p456_p7 = pnand %p455_p6, %p449_p3 }
  0x11   :  { %459 = shalt.err (!%p456_p7)
}
  0x12   :  { %s557_s11 = smov 128   ;;  %s558_s12 = smov 8  }
  0x13   :  { %37 = dma.hbm_to_vmem [thread:$0]  %s691_s1, 512, %s32_s25, [#allocation6], %s557_s11, %s557_s11, %s558_s12  }
  0x14   :  { %s559_s15 = smov [#allocation2]   ;;  %s560_s17 = smov [#allocation7]  }
  0x15   :  { %s22_s16 = sshll.u32 %s559_s15, 4  ;;  %s45_s18 = sshll.u32 %s560_s17, 4  ;;  %s23_s16 = int_to_ptr.vmem [resolvable:$true] %s22_s16  ;;  %s46_s18 = int_to_ptr.vmem [resolvable:$true] %s45_s18 }
  0x16   :  { %s460_s21 = scalar_lea.hbm %s690_s0, 32 }
  0x17   :  { %p461_p8 = scmp.ne.s32.totalorder %s690_s0, %s460_s21  ;;  %p464_p9 = scmp.lt.u32.totalorder %s460_s21, %s690_s0 }
  0x19   :  { %p466_p10 = pnand %p464_p9, %p461_p8 }
  0x1b   :  { %469 = shalt.err (!%p466_p10)
}
  0x1c   :  { %s470_s1 = scalar_lea.vmem %s23_s16, 32  ;;  %p475_p12 = scmp.lt.s32.totalorder %s23_s16, %s23_s16 }
  0x1d   :  { %p471_p11 = scmp.ne.s32.totalorder %s23_s16, %s470_s1  ;;  %p476_p13 = scmp.lt.s32.totalorder %s470_s1, %s470_s1 }
  0x1f   :  { %p477_p0 = por %p476_p13, %p475_p12 }
  0x21   :  { %p478_p1 = pnand %p477_p0, %p471_p11 }
  0x23   :  { %481 = shalt.err (!%p478_p1)
}
  0x24   :  { %25 = dma.hbm_to_vmem [thread:$0]  %s690_s0, 32, %s23_s16, [#allocation3]  }
  0x25   :  { %s482_s30 = scalar_lea.hbm %s693_s3, 512 }
  0x26   :  { %p483_p2 = scmp.ne.s32.totalorder %s693_s3, %s482_s30  ;;  %p486_p3 = scmp.lt.u32.totalorder %s482_s30, %s693_s3 }
  0x28   :  { %p488_p4 = pnand %p486_p3, %p483_p2 }
  0x2a   :  { %491 = shalt.err (!%p488_p4)
}
  0x2b   :  { %s492_s14 = scalar_lea.vmem %s46_s18, 512  ;;  %p497_p6 = scmp.lt.s32.totalorder %s46_s18, %s46_s18 }
  0x2c   :  { %p493_p5 = scmp.ne.s32.totalorder %s46_s18, %s492_s14  ;;  %p498_p7 = scmp.lt.s32.totalorder %s492_s14, %s492_s14 }
  0x2e   :  { %p499_p8 = por %p498_p7, %p497_p6 }
  0x30   :  { %p500_p9 = pnand %p499_p8, %p493_p5 }
  0x32   :  { %503 = shalt.err (!%p500_p9)
}
  0x33   :  { %51 = dma.hbm_to_vmem [thread:$0]  %s693_s3, 512, %s46_s18, [#allocation6], %s557_s11, %s557_s11, %s558_s12  }
  0x34   :  { %s561_s16 = smov [#allocation8]   ;;  %s504_s21 = scalar_lea.hbm %s695_s5, 512 }
  0x35   :  { %s59_s17 = sshll.u32 %s561_s16, 4  ;;  %p505_p10 = scmp.ne.s32.totalorder %s695_s5, %s504_s21  ;;  %s60_s17 = int_to_ptr.vmem [resolvable:$true] %s59_s17 }
  0x36   :  { %p508_p11 = scmp.lt.u32.totalorder %s504_s21, %s695_s5 }
  0x38   :  { %p510_p12 = pnand %p508_p11, %p505_p10 }
  0x3a   :  { %513 = shalt.err (!%p510_p12)
}
  0x3b   :  { %s514_s1 = scalar_lea.vmem %s60_s17, 512  ;;  %p519_p0 = scmp.lt.s32.totalorder %s60_s17, %s60_s17 }
  0x3c   :  { %p515_p13 = scmp.ne.s32.totalorder %s60_s17, %s514_s1  ;;  %p520_p1 = scmp.lt.s32.totalorder %s514_s1, %s514_s1 }
  0x3e   :  { %p521_p2 = por %p520_p1, %p519_p0 }
  0x40   :  { %p522_p3 = pnand %p521_p2, %p515_p13 }
  0x42   :  { %525 = shalt.err (!%p522_p3)
}
  0x43   :  { %65 = dma.hbm_to_vmem [thread:$0]  %s695_s5, 512, %s60_s17, [#allocation9], %s557_s11, %s557_s11, %s558_s12  }
  0x44   :  { %548 = dma.done.wait [#allocation3], 32  }
  0x45   :  { %549 = vsyncadd [#allocation3], 4294967264 }
  0x46   :  { %550 = dma.done.wait [#allocation6], 1024  }
  0x47   :  { %551 = vsyncadd [#allocation6], 4294966272 }
  0x48   :  { %552 = dma.done.wait [#allocation9], 512  }
  0x49   :  { %553 = vsyncadd [#allocation9], 4294966784  ;;  %v562_v0 = vmov 0.0|0.0   ;;  %vm563_vm0 = vmmov 0   ;;  %v564_v1 = vmov 0.0   ;;  %v81_v2 = vld [vmem:[#allocation5] sm:$0xff] }
  0x4a   :  { %410 = vmatprep.subr.bf16.mxu0 %v562_v0  ;;  %385 = vmatprep.mubr.msk.f32.mxu0 %vm563_vm0, %v564_v1  ;;  %v82_v3 = vld [vmem:[#allocation5 + $0x8] sm:$0xff]  ;;  %v83_v4 = vld [vmem:[#allocation5 + $0x10] sm:$0xff]  ;;  %v84_v6 = vld [vmem:[#allocation5 + $0x18] sm:$0xff]  ;;  %vm92_vm1 = vcmask 261120   ;;  %s565_s28 = smov [#allocation10]   ;;  %vm337_vm2 = vcmask 254976  }
  0x4b   :  { %416 = vmatprep.subr.bf16.mxu1 %v562_v0  ;;  %396 = vmatprep.mubr.msk.f32.mxu1 %vm563_vm0, %v564_v1  ;;  %v411_v5 = vpack.c.bf16 %v82_v3, %v81_v2  ;;  %v167_v7 = vld [vmem:[#allocation7] sm:$0xff]  ;;  %v168_v8 = vld [vmem:[#allocation7 + $0x8] sm:$0xff]  ;;  %v414_v9 = vpack.c.bf16 %v84_v6, %v83_v4  ;;  %v80_v11 = vld [vmem:[#allocation2] sm:$0x3]  ;;  %s345_s29 = sshll.u32 %s565_s28, 4  ;;  %s346_s29 = int_to_ptr.vmem [resolvable:$true] %s345_s29 }
  0x4c   :  { %v417_v10 = vpack.c.bf16 %v168_v8, %v167_v7  ;;  %v169_v12 = vld [vmem:[#allocation7 + $0x10] sm:$0xff]  ;;  %v170_v13 = vld [vmem:[#allocation7 + $0x18] sm:$0xff]  ;;  %v252_v15 = vld [vmem:[#allocation8] sm:$0xff]  ;;  %p531_p5 = scmp.lt.s32.totalorder %s346_s29, %s346_s29 }
  0x4d   :  { %412 = vmatpush3.bf16.msra.mxu0 %v411_v5  ;;  %v420_v14 = vpack.c.bf16 %v170_v13, %v169_v12  ;;  %v253_v16 = vld [vmem:[#allocation8 + $0x8] sm:$0xff]  ;;  %v356_v18 = vld [vmem:[%s692_s2] ss:$0 sm:$0xff]  ;;  %v254_v23 = vld [vmem:[#allocation8 + $0x10] sm:$0xff] }
  0x4e   :  { %413 = vmatprep.subr.bf16.mxu0 %v562_v0  ;;  %418 = vmatpush3.bf16.msra.mxu1 %v417_v10  ;;  %v423_v17 = vpack.c.bf16 %v253_v16, %v252_v15  ;;  %v255_v24 = vld [vmem:[#allocation8 + $0x18] sm:$0xff] }
  0x4f   :  { %419 = vmatprep.subr.bf16.mxu1 %v562_v0  ;;  %v426_v25 = vpack.c.bf16 %v255_v24, %v254_v23  ;;  %v358_v26 = vld [vmem:[%s694_s4] ss:$0 sm:$0xff]  ;;  %s526_s4 = scalar_lea.vmem %s346_s29, 32 }
  0x50   :  { %v360_v31 = vld [vmem:[%s696_s6] ss:$0 sm:$0xff]  ;;  %p527_p4 = scmp.ne.s32.totalorder %s346_s29, %s526_s4  ;;  %p532_p6 = scmp.lt.s32.totalorder %s526_s4, %s526_s4 }
  0x51   :  { %415 = vmatpush3.bf16.msra.mxu0 %v414_v9 }
  0x52   :  { %422 = vmatprep.subr.bf16.mxu0 %v562_v0  ;;  %421 = vmatpush3.bf16.msra.mxu1 %v420_v14  ;;  %p533_p7 = por %p532_p6, %p531_p5 }
  0x54   :  { %386 = vmatmul.mubr.msk.f32.vlgmr.msra.gmra.mrb[0].mxu0 %vm92_vm1, %v80_v11  ;;  %p534_p8 = pnand %p533_p7, %p527_p4 }
  0x55   :  { %407 = vmatprep.mubr.msk.f32.mxu0 %vm563_vm0, %v564_v1  ;;  %424 = vmatpush3.bf16.msra.mxu0 %v423_v17 }
  0x56   :  { %425 = vmatprep.subr.bf16.mxu0 %v562_v0 }
  0x59   :  { %427 = vmatpush3.bf16.msra.mxu0 %v426_v25 }
 0x127   :  { %v162_v19 = vpop.f32.mrb[0].mxu0 }
 0x128   :  { %v163_v20 = vadd.f32 %v356_v18, %v162_v19  ;;  %v387_v21 = vpop.f32.mrb[1].mxu0 }
 0x12a   :  { %v166_v22 = vmax.f32 %v163_v20, 0.0 }
 0x12c   :  { %397 = vmatmul.mubr.msk.f32.vlgmr.msra.gmra.mrb[0].mxu1 %vm92_vm1, %v166_v22 }
 0x1ff   :  { %v247_v27 = vpop.f32.mrb[0].mxu1 }
 0x200   :  { %v248_v28 = vadd.f32 %v358_v26, %v247_v27  ;;  %v398_v29 = vpop.f32.mrb[1].mxu1 }
 0x202   :  { %v251_v30 = vmax.f32 %v248_v28, 0.0 }
 0x204   :  { %408 = vmatmul.mubr.msk.f32.vlgmr.msra.gmra.mrb[2].mxu0 %vm92_vm1, %v251_v30 }
 0x2d7   :  { %v332_v32 = vpop.f32.mrb[2].mxu0 }
 0x2d8   :  { %v333_v33 = vadd.f32 %v360_v31, %v332_v32  ;;  %v409_v34 = vpop.f32.mrb[3].mxu0 }
 0x2da   :  { %v336_v35 = vmax.f32 %v333_v33, 0.0 }
 0x2dc   :  { %338 = vst.msk [vmem:[#allocation10] sm:$0x3] %vm337_vm2, %v336_v35 }
 0x2dd   :  { %537 = shalt.err (!%p534_p8)
}
 0x2de   :  { %s538_s6 = scalar_lea.hbm %s697_s7, 32 }
 0x2df   :  { %p539_p9 = scmp.ne.s32.totalorder %s697_s7, %s538_s6  ;;  %p542_p10 = scmp.lt.u32.totalorder %s538_s6, %s697_s7 }
 0x2e1   :  { %p544_p11 = pnand %p542_p10, %p539_p9 }
 0x2e3   :  { %547 = shalt.err (!%p544_p11)
}
 0x2e4   :  { %348 = dma.vmem_to_hbm [thread:$0]  %s346_s29, 32, %s697_s7, [#allocation4]  }
 0x2e5   :  { %554 = dma.done.wait [#allocation4], 32  }
 0x2e6   :  { %555 = vsyncadd [#allocation4], 4294967264 }
 0x2e7   :  { %352 = vsyncpa [#allocation3], 1 }
 0x2e8   :  { %353 = vsyncpa [#allocation6], 1 }
 0x2e9   :  { %354 = vsyncpa [#allocation9], 1 }
 0x2ea   :  { %355 = vsyncpa [#allocation4], 1 }

</bundles_post_ra>
